<compile_context>
chip_gen: v7x
topology: tpu7x:2x2x1
jax: 0.10.0
libtpu: 0.0.40
codegen_flags: <defaults>
</compile_context>

<pallas_src>
import functools
import math

import jax
import jax.numpy as jnp
from jax import lax
from jax.experimental import pallas as pl
from jax.experimental.pallas import tpu as pltpu


def _add_margin_kernel(x_ref, w_ref, label_ref, out_ref, *, s, m, tn):
    x = x_ref[...]                          # [TB, D]  compute dtype (bf16 -> native MXU)
    w = w_ref[...]                          # [TN, D]

    # MXU matmul on the RAW (un-normalized) operands, contracting the last
    # (lane) dim of both -- no transpose, f32 accumulation.
    dots = lax.dot_general(
        x, w, dimension_numbers=(((1,), (1,)), ((), ())),
        preferred_element_type=jnp.float32)                    # [TB, TN]

    # Normalization as a post-matmul scale of the small [TB, TN] result.
    # rsqrt(max(ssq, 1e-24)) == 1 / max(||v||, 1e-12), matching F.normalize.
    # (If bundle dumps ever show spills from the f32 upcast at very large
    # TN*D, compute ssq_w in D-chunks via an unrolled fori_loop instead.)
    x32 = x.astype(jnp.float32)
    w32 = w.astype(jnp.float32)
    ssq_x = jnp.sum(x32 * x32, axis=-1, keepdims=True)         # [TB, 1]
    ssq_w = jnp.sum(w32 * w32, axis=-1)                        # [TN]
    # Fold the scale s into the row factor -> one fewer [TB, TN] VPU multiply.
    inv_x = s * lax.rsqrt(jnp.maximum(ssq_x, 1e-24))
    inv_w = lax.rsqrt(jnp.maximum(ssq_w, 1e-24))
    scaled = dots * inv_x * inv_w[None, :]                     # s * cosine

    # one_hot(label) restricted to this class tile (scatter_ equivalent),
    # offset by the tile's first class index.
    col0 = pl.program_id(0) * tn
    col_ids = col0 + lax.broadcasted_iota(jnp.int32, scaled.shape, 1)
    one_hot = col_ids == label_ref[...]                        # [TB, 1] broadcast

    out_ref[...] = jnp.where(one_hot, scaled - s * m, scaled).astype(out_ref.dtype)


def add_margin_product(x, weight, label, *, s=30.0, m=0.4,
                       block_n=2048, block_b=512,
                       compute_dtype=jnp.bfloat16, out_dtype=None):
    """x: [B, D], weight: [N, D], label: [B] int -> [B, N] logits (out_dtype).

    compute_dtype: dtype the operands are streamed/multiplied in (f32 accum
                   always).  Default bf16 (halves W/x HBM traffic, native MXU).
    out_dtype:     logits dtype; defaults to x's original dtype.
    """
    B, D = x.shape
    N, D2 = weight.shape
    assert D == D2

    if out_dtype is None:
        out_dtype = x.dtype
    if compute_dtype is not None:
        x = x.astype(compute_dtype)
        weight = weight.astype(compute_dtype)

    itemsize_x = jnp.dtype(x.dtype).itemsize
    itemsize_w = jnp.dtype(weight.dtype).itemsize
    itemsize_o = jnp.dtype(out_dtype).itemsize

    # Batch tile: single resident block for small B, 512-row streamed blocks
    # for large B (bounds the out tile on v7x, gives the megacore a 2-D grid).
    if B <= max(8, int(block_b)):
        TB, B_pad = B, B
    else:
        TB = max(8, (int(block_b) // 8) * 8)
        B_pad = pl.cdiv(B, TB) * TB

    # Generation-aware VMEM budget (v5e/v6e: 128 MiB, v7x: 64 MiB per TC).
    try:
        vmem_cap = int(getattr(pltpu.get_tpu_info(), "vmem_capacity_bytes", 0)) or (64 << 20)
    except Exception:  # pragma: no cover - CPU interpret / old jax fallback
        vmem_cap = 64 << 20
    budget = int(0.75 * vmem_cap)

    def vmem_est(tn):
        return (2 * tn * D * itemsize_w          # W tile (double-buffered)
                + 2 * TB * D * itemsize_x        # x tile (double-buffered)
                + 2 * TB * tn * itemsize_o       # out tile (double-buffered)
                + 2 * TB * 128 * 4               # label padded to a lane
                + tn * D * 4 + TB * D * 4        # f32 upcast temps for the norms
                + 2 * TB * tn * 4                # f32 matmul / select temps
                + (2 << 20))                     # headroom

    # Lane-dense class tile: multiple of 128, as large as the budget allows.
    TN = max(128, min((int(block_n) // 128) * 128, pl.cdiv(N, 128) * 128))
    while TN > 128 and vmem_est(TN) > budget:
        TN -= 128
    N_pad = pl.cdiv(N, TN) * TN

    # Zero-padded classes/rows: raw dot is exactly 0 -> logit 0; sliced off.
    if N_pad != N:
        weight = jnp.pad(weight, ((0, N_pad - N), (0, 0)))
    if B_pad != B:
        x = jnp.pad(x, ((0, B_pad - B), (0, 0)))
    label2d = label.reshape(B, 1).astype(jnp.int32)
    if B_pad != B:
        label2d = jnp.pad(label2d, ((0, B_pad - B), (0, 0)), constant_values=-1)

    grid_n = N_pad // TN
    grid_b = B_pad // TB
    vmem_bytes = int(min(max(vmem_est(TN), 16 << 20), budget))

    kernel = functools.partial(_add_margin_kernel, s=float(s), m=float(m), tn=TN)
    out = pl.pallas_call(
        kernel,
        out_shape=jax.ShapeDtypeStruct((B_pad, N_pad), out_dtype),
        grid_spec=pltpu.PrefetchScalarGridSpec(
            num_scalar_prefetch=0,
            # Batch axis innermost: the (big) W tile is fetched once per class
            # tile and stays resident while x / out blocks stream.
            grid=(grid_n, grid_b),
            in_specs=[
                pl.BlockSpec((TB, D), lambda j, b: (b, 0)),   # x      (streamed over B)
                pl.BlockSpec((TN, D), lambda j, b: (j, 0)),   # W tile (resident over inner B loop)
                pl.BlockSpec((TB, 1), lambda j, b: (b, 0)),   # label
            ],
            out_specs=pl.BlockSpec((TB, TN), lambda j, b: (b, j)),
        ),
        compiler_params=pltpu.CompilerParams(
            dimension_semantics=("parallel", "parallel"),  # independent tiles
            vmem_limit_bytes=vmem_bytes),
        cost_estimate=pl.CostEstimate(
            flops=2 * B_pad * N_pad * D + 2 * (B_pad * grid_n + N_pad) * D,
            transcendentals=B_pad * grid_n + N_pad,
            bytes_accessed=(grid_n * B_pad * D * itemsize_x
                            + N_pad * D * itemsize_w
                            + B_pad * N_pad * itemsize_o
                            + grid_n * B_pad * 4)),
    )(x, weight, label2d)

    if B_pad != B or N_pad != N:
        out = out[:B, :N]
    return out


def _xavier_uniform(key, out_features, in_features):
    # deterministic stand-in for nn.init.xavier_uniform_
    bound = math.sqrt(6.0 / (in_features + out_features))
    return jax.random.uniform(
        key, (out_features, in_features), jnp.float32, -bound, bound)


if __name__ == "__main__":
    key = jax.random.PRNGKey(0)
    kx, kw, kl = jax.random.split(key, 3)

    # Small shapes; out_features deliberately NOT a tile multiple so the run
    # exercises class tiling, the iota offset and the padding path.
    B, in_features, out_features = 8, 32, 200
    x = jax.random.normal(kx, (B, in_features), jnp.float32)
    weight = _xavier_uniform(kw, out_features, in_features)
    label = jax.random.randint(kl, (B,), 0, out_features, jnp.int32)

    # Pure-JAX reference (matches the PyTorch module).
    xn = x / jnp.maximum(jnp.linalg.norm(x, axis=1, keepdims=True), 1e-12)
    wn = weight / jnp.maximum(jnp.linalg.norm(weight, axis=1, keepdims=True), 1e-12)
    cosine = xn @ wn.T
    one_hot = jax.nn.one_hot(label, out_features, dtype=jnp.float32)
    ref = 30.0 * (one_hot * (cosine - 0.4) + (1.0 - one_hot) * cosine)

    # Exact-semantics path (f32 operands), forced small class tiles to exercise
    # the tiled grid + iota offset: tight tolerance.
    out_f32 = add_margin_product(x, weight, label, s=30.0, m=0.4,
                                 block_n=128, compute_dtype=jnp.float32)
    jax.block_until_ready(out_f32)
    assert out_f32.shape == ref.shape
    assert jnp.allclose(out_f32, ref, atol=1e-4, rtol=1e-4)

    # Default fast path (bf16 operands, f32 accumulate, f32 logits): looser
    # tolerance as flagged in the review.
    out_fast = add_margin_product(x, weight, label, s=30.0, m=0.4)
    jax.block_until_ready(out_fast)
    assert out_fast.shape == ref.shape
    assert jnp.allclose(out_fast, ref, atol=0.5, rtol=0.05)

    print("KERNEL_OK")
</pallas_src>

<mosaic_0001>
module attributes {stable_mosaic.version = 11 : i64} {
  func.func @_add_margin_kernel(%arg0: i32, %arg1: i32, %arg2: memref<8x32xf32, #tpu.memory_space<vmem>>, %arg3: memref<128x32xf32, #tpu.memory_space<vmem>>, %arg4: memref<8x1xi32, #tpu.memory_space<vmem>>, %arg5: memref<8x128xf32, #tpu.memory_space<vmem>>) attributes {dimension_semantics = [#tpu.dimension_semantics<parallel>, #tpu.dimension_semantics<parallel>], iteration_bounds = array<i64: 2, 1>, scalar_prefetch = 0 : i64, scratch_operands = 0 : i64, tpu.core_type = #tpu.core_type<tc>, window_params = [{transform_indices = @transform_0, window_bounds = array<i64: 8, 32>}, {transform_indices = @transform_1, window_bounds = array<i64: 128, 32>}, {transform_indices = @transform_2, window_bounds = array<i64: 8, 1>}, {transform_indices = @transform_3, window_bounds = array<i64: 8, 128>}]} {
    %c0 = arith.constant 0 : index
    %c0_0 = arith.constant 0 : index
    %0 = vector.load %arg2[%c0, %c0_0] : memref<8x32xf32, #tpu.memory_space<vmem>>, vector<8x32xf32>
    %c0_1 = arith.constant 0 : index
    %c0_2 = arith.constant 0 : index
    %1 = vector.load %arg3[%c0_1, %c0_2] : memref<128x32xf32, #tpu.memory_space<vmem>>, vector<128x32xf32>
    %cst = arith.constant dense<0.000000e+00> : vector<8x128xf32>
    %2 = tpu.matmul %0, %1, %cst {dimension_numbers = #tpu.dot_dimension_numbers<[1], [1], [0], [0], [0, 0, 1, 0], [], []>} : vector<8x32xf32>, vector<128x32xf32>, vector<8x128xf32> -> vector<8x128xf32>
    %3 = arith.mulf %0, %0 : vector<8x32xf32>
    %cst_3 = arith.constant dense<0.000000e+00> : vector<8xf32>
    %4 = vector.multi_reduction <add>, %3, %cst_3 [1] : vector<8x32xf32> to vector<8xf32>
    %5 = vector.shape_cast %4 : vector<8xf32> to vector<8x1xf32>
    %6 = arith.mulf %1, %1 : vector<128x32xf32>
    %cst_4 = arith.constant dense<0.000000e+00> : vector<128xf32>
    %7 = vector.multi_reduction <add>, %6, %cst_4 [1] : vector<128x32xf32> to vector<128xf32>
    %cst_5 = arith.constant 1.000000e-24 : f32
    %8 = vector.broadcast %cst_5 : f32 to vector<8x1xf32>
    %9 = arith.maximumf %5, %8 : vector<8x1xf32>
    %10 = math.rsqrt %9 : vector<8x1xf32>
    %cst_6 = arith.constant 3.000000e+01 : f32
    %11 = vector.broadcast %cst_6 : f32 to vector<8x1xf32>
    %12 = arith.mulf %11, %10 : vector<8x1xf32>
    %cst_7 = arith.constant 1.000000e-24 : f32
    %13 = vector.broadcast %cst_7 : f32 to vector<128xf32>
    %14 = arith.maximumf %7, %13 : vector<128xf32>
    %15 = math.rsqrt %14 : vector<128xf32>
    %16 = vector.broadcast %12 : vector<8x1xf32> to vector<8x128xf32>
    %17 = arith.mulf %2, %16 : vector<8x128xf32>
    %18 = vector.shape_cast %15 : vector<128xf32> to vector<1x128xf32>
    %19 = vector.broadcast %18 : vector<1x128xf32> to vector<8x128xf32>
    %20 = arith.mulf %17, %19 : vector<8x128xf32>
    %c128_i32 = arith.constant 128 : i32
    %21 = arith.muli %arg0, %c128_i32 : i32
    %22 = tpu.iota {dimensions = array<i32: 1>} : vector<8x128xi32>
    %23 = vector.broadcast %21 : i32 to vector<8x128xi32>
    %24 = arith.addi %23, %22 : vector<8x128xi32>
    %c0_8 = arith.constant 0 : index
    %c0_9 = arith.constant 0 : index
    %25 = vector.load %arg4[%c0_8, %c0_9] : memref<8x1xi32, #tpu.memory_space<vmem>>, vector<8x1xi32>
    %26 = vector.broadcast %25 : vector<8x1xi32> to vector<8x128xi32>
    %27 = arith.cmpi eq, %24, %26 : vector<8x128xi32>
    %cst_10 = arith.constant 1.200000e+01 : f32
    %28 = vector.broadcast %cst_10 : f32 to vector<8x128xf32>
    %29 = arith.subf %20, %28 : vector<8x128xf32>
    %30 = arith.select %27, %29, %20 : vector<8x128xi1>, vector<8x128xf32>
    %c0_11 = arith.constant 0 : index
    %c0_12 = arith.constant 0 : index
    %31 = vector.load %arg5[%c0_11, %c0_12] : memref<8x128xf32, #tpu.memory_space<vmem>>, vector<8x128xf32>
    tpu.vector_store %arg5[%c0_11, %c0_12], %30 {strides = array<i32>} : memref<8x128xf32, #tpu.memory_space<vmem>>, vector<8x128xf32>,
    return
  }
  func.func @transform_0(%arg0: i32, %arg1: i32) -> (i32, i32) {
    %c0_i32 = arith.constant 0 : i32
    %c0_i32_0 = arith.constant 0 : i32
    return %arg1, %c0_i32 : i32, i32
  }
  func.func @transform_1(%arg0: i32, %arg1: i32) -> (i32, i32) {
    %c0_i32 = arith.constant 0 : i32
    %c0_i32_0 = arith.constant 0 : i32
    return %arg0, %c0_i32 : i32, i32
  }
  func.func @transform_2(%arg0: i32, %arg1: i32) -> (i32, i32) {
    %c0_i32 = arith.constant 0 : i32
    %c0_i32_0 = arith.constant 0 : i32
    return %arg1, %c0_i32 : i32, i32
  }
  func.func @transform_3(%arg0: i32, %arg1: i32) -> (i32, i32) {
    %c0_i32 = arith.constant 0 : i32
    return %arg1, %arg0 : i32, i32
  }
}

</mosaic_0001>

<bundles_post_ra>
// kernel: tpu_custom_call.1
= control target key start
LH: loop header
LB: loop body
LE: loop exit
PB: predicated region body
PF: predicated region fallthrough
CT: control target
= control target key end

     0   :  { %8 = vsyncpa [#allocation3], 0  ;;  %s1266_s0 = inlined_call_operand.vmem [shape: f32[8,32], index: 0, kind: input, shape index: {}]   ;;  %s1267_s1 = inlined_call_operand.vmem [shape: f32[256,32], index: 1, kind: input, shape index: {}]   ;;  %s1268_s2 = inlined_call_operand.vmem [shape: s32[8,1], index: 2, kind: input, shape index: {}]   ;;  %s1269_s3 = inlined_call_operand.hbm [shape: f32[8,256], index: 3, kind: output, shape index: {}]  }
   0x1   :  { %10 = vsyncpa [#allocation3 + $0x1], 0  ;;  %s1046_s12 = smov 0   ;;  %s1048_s13 = smov 0  }
   0x2   :  { %s1050_s14 = smov 0   ;;  %s1052_s15 = smov 0  }
   0x3   :  { %s1054_s16 = smov 0   ;;  %s1056_s17 = smov 0  }
   0x4 LB: > { %s729_s18 = sadd.s32 4294967295, %s1019_s17   ;;  %s730_s19 = sadd.s32 4294967294, %s1019_s17   ;;  %s1019_s17 = sphi %s1056_s17, %s16_s17   ;;  %s1015_s16 = sphi %s1054_s16, %s1278_s16   ;;  %s1011_s15 = sphi %s1052_s15, %s1277_s15   ;;  %s1007_s14 = sphi %s1050_s14, %s1276_s14   ;;  %s1003_s13 = sphi %s1048_s13, %s1275_s13   ;;  %s999_s12 = sphi %s1046_s12, %s1274_s12  }
   0x5   : > { %s28_s20 = sadd.s32 1, %s1015_s16  ;;  %s115_s21 = sadd.s32 1, %s1007_s14 }
   0x6   : > { %p30_p0 = scmp.ge.s32.totalorder %s28_s20, 2  ;;  %p125_p1 = scmp.ne.s32.totalorder %s1007_s14, %s1003_s13 }
   0x7   : > { %p126_p2 = scmp.eq.s32.totalorder %s729_s18, 1  ;;  %p131_p3 = scmp.ne.s32.totalorder %s1003_s13, %s999_s12 }
   0x8   : > { %s1280_s20 = smov (%p30_p0, %s28_s20), 0  ;;  %p132_p5 = scmp.eq.s32.totalorder %s730_s19, 1 }
   0x9   : > { %p1086_p4 = por %p126_p2, %p125_p1  ;;  %s111_s23 = ssub.s32 %s1015_s16, %s1280_s20 }
   0xa   : > { %p735_p6 = scmp.ge.s32.totalorder %s1019_s17, 1  ;;  %p113_p7 = scmp.eq.s32.totalorder %s111_s23, 0 }
   0xb   : > { %p1093_p8 = por %p132_p5, %p131_p3  ;;  %p173_p9 = scmp.lt.s32.totalorder %s1019_s17, 3 }
   0xc   : > { %s1099_s25 = scalar_select %p113_p7, %s1007_s14, %s115_s21  }
   0xd   : > { %p174_p10 = pnand %p735_p6, %p173_p9 }
   0xe   : > { %s737_s26 = sshll.u32 (!%p174_p10), %s1011_s15, 4  ;;  %v1021_v0 = vmov (!%p174_p10), 0.0|0.0   ;;  %vm1022_vm0 = vmmov (!%p174_p10), 0   ;;  %v1023_v1 = vmov (!%p174_p10), 0.0   ;;  %v1024_v2 = vmov (!%p174_p10), 0   ;;  %v219_v48 = vld [vmem:[%s1266_s0] sm:$0xff] (!%p174_p10) }
   0xf   : > { %177 = sbr.rel (%p174_p10) target bundleno = 324 (0x144), region = 32  ;;  %814 = vmatprep.subr.bf16.mxu0 (!%p174_p10), %v1021_v0  ;;  %p210_p11 = scmp.lt.s32.totalorder (!%p174_p10), %s737_s26, 31  ;;  %811 = vmatprep.mubr.msk.f32.mxu0 (!%p174_p10), %vm1022_vm0, %v1023_v1  ;;  %vm236_vm1 = vcmask (!%p174_p10), 261120   ;;  %v358_v51 = vmul.f32 (!%p174_p10), %v219_v48, %v219_v48  ;;  %v606_v62 = vld [vmem:[%s1268_s2] sm:$0xff] (!%p174_p10)  ;;  %vm489_vm3 = vcmask (!%p174_p10), 130112   ;;  %vm496_vm4 = vcmask (!%p174_p10), 195712  }
  0x10   : > { %905 = vset.pattern.permute.xlu1 (!%p174_p10), %v1024_v2  ;;  %906 = vset.pattern.permute.xlu0 (!%p174_p10), %v1024_v2  ;;  %vm1110_vm2 = vmpackc.low (!%p174_p10), %vm236_vm1, %vm236_vm1  ;;  %vm503_vm5 = vcmask (!%p174_p10), 261312   ;;  %vm510_vm6 = vcmask (!%p174_p10), 326912   ;;  %vm517_vm7 = vcmask (!%p174_p10), 392512   ;;  %vm524_vm8 = vcmask (!%p174_p10), 458112   ;;  %s756_s8 = sshll.u32 (!%p174_p10), %s1011_s15, 7  ;;  %s202_s9 = sand.u32 (!%p174_p10), 1, %s1003_s13  }
  0x11   : > { %v359_v55 = vsel (!%p174_p10), %vm236_vm1, %v358_v51, 0.0  ;;  %vm531_vm9 = vcmask (!%p174_p10), 523712   ;;  %vm538_vm10 = vcmask (!%p174_p10), 589312   ;;  %vm545_vm11 = vcmask (!%p174_p10), 654912   ;;  %s736_s10 = sshll.u32 (!%p174_p10), %s202_s9, 3  ;;  %s1219_s21 = scalar_lea.hbm (!%p174_p10), %s1269_s3, %s756_s8 }
  0x12   : > { %vm552_vm12 = vcmask (!%p174_p10), 720512   ;;  %vm559_vm13 = vcmask (!%p174_p10), 786112   ;;  %vm566_vm14 = vcmask (!%p174_p10), 851712   ;;  %vm573_vm15 = vcmask (!%p174_p10), 917312   ;;  %s204_s11 = scalar_lea.vmem (!%p174_p10), [#allocation2], %s736_s10  ;;  %s615_s23 = scalar_lea.sflag (!%p174_p10), [#allocation3], %s202_s9 }
  0x13   : > { %vm580_vm0 = vcmask (!%p174_p10), 982912   ;;  %s630_s15 = sshll.u32 (!%p174_p10), %s204_s11, 4  ;;  %s1221_s15 = int_to_ptr.vmem [resolvable:$true] %s630_s15 }
  0x16   : > { %s1282_s26 = smov (!%p210_p11, %s737_s26), 31 }
  0x17   : > { %s738_s27 = sshll.u32 %s1282_s26, 3  ;;  %s941_s26 = scalar_lea.vmem %s1221_s15, 128 }
  0x18   : > { %s1106_s30 = scalar_lea.vmem %s1267_s1, %s738_s27  ;;  %p942_p12 = scmp.ne.s32.totalorder %s1221_s15, %s941_s26 }
  0x19   : > { %v220_v4 = vld [vmem:[%s1106_s30] sm:$0xff]  ;;  %v221_v5 = vld [vmem:[%s1106_s30 + $0x8] sm:$0xff]  ;;  %v222_v6 = vld [vmem:[%s1106_s30 + $0x10] sm:$0xff]  ;;  %s1025_s27 = smov [#allocation2]  }
  0x1a   : > { %v815_v7 = vpack.c.bf16 %v221_v5, %v220_v4  ;;  %v223_v8 = vld [vmem:[%s1106_s30 + $0x18] sm:$0xff]  ;;  %v362_v9 = vmul.f32 %v220_v4, %v220_v4  ;;  %v364_v10 = vmul.f32 %v222_v6, %v222_v6  ;;  %v363_v11 = vmul.f32 %v221_v5, %v221_v5  ;;  %v224_v15 = vld [vmem:[%s1106_s30 + $0x20] sm:$0xff]  ;;  %v225_v16 = vld [vmem:[%s1106_s30 + $0x28] sm:$0xff]  ;;  %p943_p13 = pnand %p942_p12, %p1086_p4  ;;  %s945_s28 = sshll.u32 %s1025_s27, 4  ;;  %s946_s28 = int_to_ptr.vmem [resolvable:$false] %s945_s28 }
  0x1b   : > { %v365_v12 = vmul.f32 %v223_v8, %v223_v8  ;;  %v366_v18 = vmul.f32 %v224_v15, %v224_v15  ;;  %v367_v20 = vmul.f32 %v225_v16, %v225_v16  ;;  %v819_v21 = vpack.c.bf16 %v223_v8, %v222_v6  ;;  %v226_v22 = vld [vmem:[%s1106_s30 + $0x30] sm:$0xff]  ;;  %v227_v23 = vld [vmem:[%s1106_s30 + $0x38] sm:$0xff]  ;;  %v228_v28 = vld [vmem:[%s1106_s30 + $0x40] sm:$0xff]  ;;  %s947_s29 = scalar_lea.vmem %s946_s28, 256  ;;  %p948_p1 = scmp.lt.s32.totalorder %s1221_s15, %s946_s28 }
  0x1c   : > { %817 = vmatpush3.bf16.xpose.msk.msra.mxu0 %vm1110_vm2, %v815_v7  ;;  %v378_v13 = vsel %vm236_vm1, %v362_v9, 0.0  ;;  %v384_v14 = vsel %vm236_vm1, %v364_v10, 0.0  ;;  %v381_v17 = vsel %vm236_vm1, %v363_v11, 0.0  ;;  %v368_v25 = vmul.f32 %v226_v22, %v226_v22  ;;  %v229_v29 = vld [vmem:[%s1106_s30 + $0x48] sm:$0xff]  ;;  %v230_v35 = vld [vmem:[%s1106_s30 + $0x50] sm:$0xff]  ;;  %v231_v36 = vld [vmem:[%s1106_s30 + $0x58] sm:$0xff]  ;;  %p944_p0 = pneg %p943_p13  ;;  %p949_p2 = scmp.lt.s32.totalorder %s947_s29, %s941_s26 }
  0x1d   : > { %818 = vmatprep.subr.bf16.mxu0 %v1021_v0  ;;  %379 = vadd.xlane.f32.xlu0 %v378_v13  ;;  %v387_v19 = vsel %vm236_vm1, %v365_v12, 0.0  ;;  %v390_v24 = vsel %vm236_vm1, %v366_v18, 0.0  ;;  %v393_v26 = vsel %vm236_vm1, %v367_v20, 0.0  ;;  %v369_v27 = vmul.f32 %v227_v23, %v227_v23  ;;  %v232_v41 = vld [vmem:[%s1106_s30 + $0x60] sm:$0xff]  ;;  %v233_v42 = vld [vmem:[%s1106_s30 + $0x68] sm:$0xff]  ;;  %v234_v49 = vld [vmem:[%s1106_s30 + $0x70] sm:$0xff] }
  0x1e   : > { %385 = vadd.xlane.f32.xlu1 %v384_v14  ;;  %v396_v30 = vsel %vm236_vm1, %v368_v25, 0.0  ;;  %v370_v31 = vmul.f32 %v228_v28, %v228_v28  ;;  %v371_v33 = vmul.f32 %v229_v29, %v229_v29  ;;  %v823_v34 = vpack.c.bf16 %v225_v16, %v224_v15  ;;  %v235_v54 = vld [vmem:[%s1106_s30 + $0x78] sm:$0xff]  ;;  %p950_p3 = por %p949_p2, %p948_p1 }
  0x1f   : > { %v399_v32 = vsel %vm236_vm1, %v369_v27, 0.0  ;;  %v372_v38 = vmul.f32 %v230_v35, %v230_v35  ;;  %v373_v40 = vmul.f32 %v231_v36, %v231_v36  ;;  %v374_v44 = vmul.f32 %v232_v41, %v232_v41 }
  0x20   : > { %v402_v37 = vsel %vm236_vm1, %v370_v31, 0.0  ;;  %v405_v39 = vsel %vm236_vm1, %v371_v33, 0.0  ;;  %v375_v46 = vmul.f32 %v233_v42, %v233_v42  ;;  %v827_v47 = vpack.c.bf16 %v227_v23, %v226_v22  ;;  %p951_p5 = pnand %p950_p3, %p944_p0 }
  0x21   : > { %382 = vadd.xlane.f32.xlu0 %v381_v17  ;;  %v408_v43 = vsel %vm236_vm1, %v372_v38, 0.0  ;;  %v411_v45 = vsel %vm236_vm1, %v373_v40, 0.0  ;;  %v414_v50 = vsel %vm236_vm1, %v374_v44, 0.0  ;;  %v376_v53 = vmul.f32 %v234_v49, %v234_v49 }
  0x22   : > { %388 = vadd.xlane.f32.xlu1 %v387_v19  ;;  %v417_v52 = vsel %vm236_vm1, %v375_v46, 0.0  ;;  %v377_v56 = vmul.f32 %v235_v54, %v235_v54  ;;  %v831_v58 = vpack.c.bf16 %v229_v29, %v228_v28  ;;  %v835_v60 = vpack.c.bf16 %v231_v36, %v230_v35 }
  0x23   : > { %v420_v57 = vsel %vm236_vm1, %v376_v53, 0.0  ;;  %v839_v61 = vpack.c.bf16 %v233_v42, %v232_v41  ;;  %v843_v63 = vpack.c.bf16 %v235_v54, %v234_v49  ;;  %v478_v8 = vlaneseq }
  0x24   : > { %821 = vmatpush3.bf16.xpose.msk.msra.mxu0 %vm1110_vm2, %v819_v21  ;;  %v423_v59 = vsel %vm236_vm1, %v377_v56, 0.0 }
  0x25   : > { %822 = vmatprep.subr.bf16.mxu0 %v1021_v0  ;;  %391 = vadd.xlane.f32.xlu0 %v390_v24  ;;  %v1177_v11 = vand.u32 127, %v478_v8  ;;  %v1179_v3 = vshrl.u32 %v478_v8, 7 }
  0x26   : > { %394 = vadd.xlane.f32.xlu1 %v393_v26 }
  0x27   : > { %v484_v13 = vadd.s32 4294967288, %v1177_v11  ;;  %v491_v16 = vadd.s32 4294967280, %v1177_v11  ;;  %v482_v20 = vsub.s32 %v1177_v11, %v1179_v3  ;;  %v498_v23 = vadd.s32 4294967272, %v1177_v11 }
  0x28   : > { %v519_v44 = vadd.s32 4294967248, %v1177_v11  ;;  %v526_v51 = vadd.s32 4294967240, %v1177_v11 }
  0x29   : > { %397 = vadd.xlane.f32.xlu0 %v396_v30  ;;  %v487_v21 = vsub.s32 %v484_v13, %v1179_v3  ;;  %v494_v26 = vsub.s32 %v491_v16, %v1179_v3  ;;  %v505_v30 = vadd.s32 4294967264, %v1177_v11  ;;  %v501_v33 = vsub.s32 %v498_v23, %v1179_v3 }
  0x2a   : > { %400 = vadd.xlane.f32.xlu1 %v399_v32  ;;  %v522_v54 = vsub.s32 %v519_v44, %v1179_v3 }
  0x2b   : > { %v508_v40 = vsub.s32 %v505_v30, %v1179_v3 }
  0x2c   : > { %825 = vmatpush3.bf16.xpose.msk.msra.mxu0 %vm1110_vm2, %v823_v34 }
  0x2d   : > { %826 = vmatprep.subr.bf16.mxu0 %v1021_v0  ;;  %403 = vadd.xlane.f32.xlu0 %v402_v37  ;;  %v512_v37 = vadd.s32 4294967256, %v1177_v11 }
  0x2e   : > { %406 = vadd.xlane.f32.xlu1 %v405_v39 }
  0x31   : > { %409 = vadd.xlane.f32.xlu0 %v408_v43 }
  0x32   : > { %412 = vadd.xlane.f32.xlu1 %v411_v45 }
  0x34   : > { %829 = vmatpush3.bf16.xpose.msk.msra.mxu0 %vm1110_vm2, %v827_v47  ;;  %v515_v47 = vsub.s32 %v512_v37, %v1179_v3 }
  0x35   : > { %830 = vmatprep.subr.bf16.mxu0 %v1021_v0  ;;  %415 = vadd.xlane.f32.xlu0 %v414_v50 }
  0x36   : > { %418 = vadd.xlane.f32.xlu1 %v417_v52 }
  0x39   : > { %360 = vadd.xlane.f32.xlu0 %v359_v55 }
  0x3a   : > { %421 = vadd.xlane.f32.xlu1 %v420_v57 }
  0x3c   : > { %833 = vmatpush3.bf16.xpose.msk.msra.mxu0 %vm1110_vm2, %v831_v58  ;;  %v533_v58 = vadd.s32 4294967232, %v1177_v11 }
  0x3d   : > { %834 = vmatprep.subr.bf16.mxu0 %v1021_v0  ;;  %424 = vadd.xlane.f32.xlu0 %v423_v59 }
  0x44   : > { %837 = vmatpush3.bf16.xpose.msk.msra.mxu0 %vm1110_vm2, %v835_v60 }
  0x45   : > { %838 = vmatprep.subr.bf16.mxu0 %v1021_v0 }
  0x4b   : > { %608 = vperm.xlu1 %905, %v606_v62  }
  0x4c   : > { %841 = vmatpush3.bf16.xpose.msk.msra.mxu0 %vm1110_vm2, %v839_v61  ;;  %v529_v61 = vsub.s32 %v526_v51, %v1179_v3  ;;  %v604_v51 = vstv %s756_s8 }
  0x4d   : > { %842 = vmatprep.subr.bf16.mxu0 %v1021_v0 }
  0x54   : > { %845 = vmatpush3.bf16.xpose.msk.msra.mxu0 %vm1110_vm2, %v843_v63 }
  0x5b   : > { %812 = vmatmul.mubr.msk.f32.vlgmr.msra.gmra.mrb[0].mxu0 %vm236_vm1, %v219_v48  ;;  %vm587_vm1 = vcmask 1048512  }
  0xaa   : > { %v380_v1 = vpop.xlane.xlu0 %379 }
  0xab   : > { %v386_v2 = vpop.xlane.xlu1 %385  ;;  %v429_v5 = vmax.f32 %v380_v1, 1e-24 }
  0xac   : > { %v431_v9 = vmax.f32 %v386_v2, 1e-24  ;;  %v540_v2 = vadd.s32 4294967224, %v1177_v11 }
  0xad   : > { %907 = vrsqrt.f32 %v429_v5 }
  0xae   : > { %v383_v4 = vpop.xlane.xlu0 %382  ;;  %v543_v13 = vsub.s32 %v540_v2, %v1179_v3 }
  0xaf   : > { %v430_v6 = vmax.f32 %v383_v4, 1e-24  ;;  %v389_v7 = vpop.xlane.xlu1 %388 }
  0xb0   : > { %v432_v0 = vmax.f32 %v389_v7, 1e-24 }
  0xb1   : > { %909 = vrsqrt.f32 %v430_v6  ;;  %v536_v6 = vsub.s32 %v533_v58, %v1179_v3 }
  0xb2   : > { %v392_v10 = vpop.xlane.xlu0 %391  ;;  %911 = vrsqrt.f32 %v431_v9 }
  0xb3   : > { %v395_v12 = vpop.xlane.xlu1 %394  ;;  %v433_v14 = vmax.f32 %v392_v10, 1e-24  ;;  %913 = vrsqrt.f32 %v432_v0  ;;  %v547_v10 = vadd.s32 4294967216, %v1177_v11 }
  0xb4   : > { %v434_v17 = vmax.f32 %v395_v12, 1e-24 }
  0xb5   : > { %915 = vrsqrt.f32 %v433_v14 }
  0xb6   : > { %v398_v15 = vpop.xlane.xlu0 %397  ;;  %917 = vrsqrt.f32 %v434_v17  ;;  %v554_v17 = vadd.s32 4294967208, %v1177_v11 }
  0xb7   : > { %v401_v18 = vpop.xlane.xlu1 %400  ;;  %v908_v19 = vpop.eup %907  ;;  %v435_v24 = vmax.f32 %v398_v15, 1e-24 }
  0xb8   : > { %v483_v28 = vrot.slane %v908_v19, %v482_v20  ;;  %v436_v31 = vmax.f32 %v401_v18, 1e-24  ;;  %v550_v20 = vsub.s32 %v547_v10, %v1179_v3 }
  0xb9   : > { %919 = vrsqrt.f32 %v435_v24  ;;  %v561_v24 = vadd.s32 4294967200, %v1177_v11 }
  0xba   : > { %v404_v25 = vpop.xlane.xlu0 %403  ;;  %921 = vrsqrt.f32 %v436_v31  ;;  %v568_v31 = vadd.s32 4294967192, %v1177_v11 }
  0xbb   : > { %v910_v22 = vpop.eup %909  ;;  %v407_v32 = vpop.xlane.xlu1 %406  ;;  %v437_v38 = vmax.f32 %v404_v25, 1e-24 }
  0xbc   : > { %v912_v27 = vpop.eup %911  ;;  %v488_v29 = vrot.slane %v910_v22, %v487_v21  ;;  %v438_v45 = vmax.f32 %v407_v32, 1e-24  ;;  %v564_v32 = vsub.s32 %v561_v24, %v1179_v3  ;;  %v571_v37 = vsub.s32 %v568_v31, %v1179_v3 }
  0xbd   : > { %v914_v34 = vpop.eup %913  ;;  %v495_v35 = vrot.slane %v912_v27, %v494_v26  ;;  %923 = vrsqrt.f32 %v437_v38  ;;  %v557_v26 = vsub.s32 %v554_v17, %v1179_v3 }
  0xbe   : > { %v490_v36 = vsel %vm489_vm3, %v488_v29, %v483_v28  ;;  %v410_v39 = vpop.xlane.xlu0 %409  ;;  %v502_v42 = vrot.slane %v914_v34, %v501_v33  ;;  %925 = vrsqrt.f32 %v438_v45 }
  0xbf   : > { %v916_v41 = vpop.eup %915  ;;  %v497_v43 = vsel %vm496_vm4, %v495_v35, %v490_v36  ;;  %v413_v46 = vpop.xlane.xlu1 %412  ;;  %v439_v52 = vmax.f32 %v410_v39, 1e-24  ;;  %v575_v36 = vadd.s32 4294967184, %v1177_v11 }
  0xc0   : > { %v918_v48 = vpop.eup %917  ;;  %v509_v49 = vrot.slane %v916_v41, %v508_v40  ;;  %v504_v50 = vsel %vm503_vm5, %v502_v42, %v497_v43  ;;  %v440_v59 = vmax.f32 %v413_v46, 1e-24  ;;  %v582_v41 = vadd.s32 4294967176, %v1177_v11 }
  0xc1   : > { %v516_v56 = vrot.slane %v918_v48, %v515_v47  ;;  %927 = vrsqrt.f32 %v439_v52  ;;  %v578_v42 = vsub.s32 %v575_v36, %v1179_v3 }
  0xc2   : > { %v416_v53 = vpop.xlane.xlu0 %415  ;;  %v511_v57 = vsel %vm510_vm6, %v509_v49, %v504_v50  ;;  %929 = vrsqrt.f32 %v440_v59  ;;  %v585_v46 = vsub.s32 %v582_v41, %v1179_v3 }
  0xc3   : > { %v920_v55 = vpop.eup %919  ;;  %v419_v60 = vpop.xlane.xlu1 %418  ;;  %v518_v1 = vsel %vm517_vm7, %v516_v56, %v511_v57  ;;  %v441_v4 = vmax.f32 %v416_v53, 1e-24  ;;  %v605_v56 = vadd.s32 %v604_v51, %v1177_v11 }
  0xc4   : > { %v922_v62 = vpop.eup %921  ;;  %v523_v63 = vrot.slane %v920_v55, %v522_v54  ;;  %v442_v0 = vmax.f32 %v419_v60, 1e-24 }
  0xc5   : > { %v530_v8 = vrot.slane %v922_v62, %v529_v61  ;;  %931 = vrsqrt.f32 %v441_v4 }
  0xc6   : > { %v361_v5 = vpop.xlane.xlu0 %360  ;;  %v525_v9 = vsel %vm524_vm8, %v523_v63, %v518_v1  ;;  %933 = vrsqrt.f32 %v442_v0 }
  0xc7   : > { %v924_v7 = vpop.eup %923  ;;  %v422_v12 = vpop.xlane.xlu1 %421  ;;  %v532_v16 = vsel %vm531_vm9, %v530_v8, %v525_v9  ;;  %v426_v27 = vmax.f32 %v361_v5, 1e-24 }
  0xc8   : > { %v926_v14 = vpop.eup %925  ;;  %v537_v15 = vrot.slane %v924_v7, %v536_v6  ;;  %v443_v18 = vmax.f32 %v422_v12, 1e-24 }
  0xc9   : > { %v544_v22 = vrot.slane %v926_v14, %v543_v13 }
  0xca   : > { %v425_v19 = vpop.xlane.xlu0 %424  ;;  %v539_v23 = vsel %vm538_vm10, %v537_v15, %v532_v16  ;;  %935 = vrsqrt.f32 %v443_v18 }
  0xcb   : > { %v928_v21 = vpop.eup %927  ;;  %v444_v25 = vmax.f32 %v425_v19, 1e-24  ;;  %v546_v30 = vsel %vm545_vm11, %v544_v22, %v539_v23  ;;  %v609_v3 = vpop.permute.xlu1 %608 }
  0xcc   : > { %v930_v28 = vpop.eup %929  ;;  %v551_v29 = vrot.slane %v928_v21, %v550_v20  ;;  %vm610_vm2 = vcmp.eq.s32.totalorder %v605_v56, %v609_v3 }
  0xcd   : > { %937 = vrsqrt.f32 %v444_v25  ;;  %v558_v34 = vrot.slane %v930_v28, %v557_v26 }
  0xce   : > { %939 = vrsqrt.f32 %v426_v27  ;;  %v553_v35 = vsel %vm552_vm12, %v551_v29, %v546_v30 }
  0xcf   : > { %v932_v33 = vpop.eup %931  ;;  %v560_v40 = vsel %vm559_vm13, %v558_v34, %v553_v35 }
  0xd0   : > { %v934_v38 = vpop.eup %933  ;;  %v565_v39 = vrot.slane %v932_v33, %v564_v32 }
  0xd1   : > { %v572_v44 = vrot.slane %v934_v38, %v571_v37 }
  0xd2   : > { %v567_v45 = vsel %vm566_vm14, %v565_v39, %v560_v40 }
  0xd3   : > { %v574_v50 = vsel %vm573_vm15, %v572_v44, %v567_v45 }
  0xd4   : > { %v936_v43 = vpop.eup %935 }
  0xd5   : > { %v579_v48 = vrot.slane %v936_v43, %v578_v42 }
  0xd7   : > { %v938_v47 = vpop.eup %937  ;;  %v581_v54 = vsel %vm580_vm0, %v579_v48, %v574_v50 }
  0xd8   : > { %v940_v49 = vpop.eup %939  ;;  %v586_v52 = vrot.slane %v938_v47, %v585_v46 }
  0xd9   : > { %v428_v53 = vmul.f32 30.0, %v940_v49 }
  0xda   : > { %v588_v59 = vsel %vm587_vm1, %v586_v52, %v581_v54 }
 0x12e   : > { %v354_v55 = vpop.f32.mrb[0].mxu0 }
 0x12f   : > { %v461_v57 = vmul.f32 %v428_v53, %v354_v55  ;;  %v813_v58 = vpop.f32.mrb[1].mxu0 }
 0x131   : > { %v602_v60 = vmul.f32 %v588_v59, %v461_v57 }
 0x133   : > { %v757_v61 = vadd.f32 -12.0, %v602_v60 }
 0x135   : > { %v612_v11 = vsel %vm610_vm2, %v757_v61, %v602_v60 }
 0x136   : > { %613 = vst [vmem:[%s204_s11] sm:$0xff] %v612_v11 }
 0x137   : > { %954 = shalt.err (!%p951_p5)
}
 0x138   : > { %s955_s30 = scalar_lea.hbm %s1219_s21, 128  ;;  %s959_s6 = scalar_lea.hbm %s1269_s3, 256 }
 0x139   : > { %p956_p6 = scmp.ne.s32.totalorder %s1219_s21, %s955_s30  ;;  %p960_p10 = scmp.lt.u32.totalorder %s1219_s21, %s1269_s3 }
 0x13a   : > { %p961_p11 = scmp.lt.u32.totalorder %s959_s6, %s955_s30  ;;  %p963_p13 = scmp.lt.u32.totalorder %s955_s30, %s1219_s21 }
 0x13b   : > { %p957_p7 = pnand %p956_p6, %p1086_p4 }
 0x13c   : > { %p962_p12 = por %p961_p11, %p960_p10 }
 0x13d   : > { %p958_p9 = pneg %p957_p7 }
 0x13e   : > { %p964_p0 = por %p963_p13, %p962_p12 }
 0x140   : > { %p965_p1 = pnand %p964_p0, %p958_p9 }
 0x142   : > { %968 = shalt.err (!%p965_p1)
}
 0x143   : > { %846 = dma.vmem_to_hbm [thread:$0]  (%p1086_p4), %s1221_s15, 128, %s1219_s21, %s615_s23  }
 0x144 PF: > { %p852_p2 = scmp.ge.s32.totalorder %s1019_s17, 2  ;;  %s642_s9 = sand.u32 1, %s999_s12  }
 0x145   : > { %s643_s10 = scalar_lea.sflag [#allocation3], %s642_s9 }
 0x146   : > { %p849_p3 = pnand %p852_p2, %p1093_p8 }
 0x148   : > { %994 = dma.done.wait (!%p849_p3), %s643_s10, 128  }
 0x149   : > { %996 = vsyncadd (!%p849_p3), %s643_s10, 4294967168  ;;  %s16_s17 = sadd.s32 1, %s1019_s17   ;;  %s1274_s12 = smov %s1003_s13 }
 0x14a   : > { %p13_p5 = scmp.ge.s32.totalorder %s16_s17, 4   ;;  %s1275_s13 = smov %s1007_s14 }
 0x14b   : > { %s1276_s14 = smov %s1099_s25  ;;  %s1277_s15 = smov %s1015_s16 }
 0x14c   : > { %s1278_s16 = smov %s1280_s20  ;;  %15 = sbr.rel (!%p13_p5) target bundleno = 4 (0x4), region = 73 }
 0x153   :  { %648 = vsyncpa [#allocation3], 1 }
 0x154   :  { %650 = vsyncpa [#allocation3 + $0x1], 1 }

</bundles_post_ra>
